<compile_context>
chip_gen: v5e
topology: v5e:2x2
jax: 0.10.0
libtpu: 0.0.40
codegen_flags: <defaults>
</compile_context>

<pallas_src>
import jax
import jax.numpy as jnp
import numpy as np
from jax.experimental import pallas as pl
from jax.experimental.pallas import tpu as pltpu


def _round_up(x, m):
    return ((x + m - 1) // m) * m


# ---------------------------------------------------------------------------
# Kernel
# ---------------------------------------------------------------------------
def gcn_layer_kernel(h_ref, adj_ref, wcat_ref, bcat_ref, wgo_ref, o_ref):
    BB, N, _ = adj_ref.shape          # batches per grid step, padded node count
    D = wgo_ref.shape[0]              # padded feature dim (multiple of 128)
    gemm_dtype = wcat_ref.dtype       # f32, or bf16 when use_bf16_gemm=True

    hs = h_ref[...]                                           # (BB*N, D) f32
    hg = hs.astype(gemm_dtype) if hs.dtype != gemm_dtype else hs

    # Fused h-side GEMM:  [v | gate_u] = h @ [Wv | Wu@Wg_u] + [bv | bu@Wg_u + bg]
    vu = jnp.dot(hg, wcat_ref[...],
                 preferred_element_type=jnp.float32) + bcat_ref[...]   # (BB*N, 2D)
    v = vu[:, :D]                                             # lane-aligned split
    gate_u = vu[:, D:]

    wgo = wgo_ref[...]

    # out = adj @ v as per-batch 2-D MXU dots; adj upcast one (N, N) slab at a time
    # (avoids a full (BB, N, N) f32 live temp).
    for b in range(BB):
        r0, r1 = b * N, (b + 1) * N
        a = adj_ref[b].astype(jnp.float32)                    # (N, N)
        vb = v[r0:r1, :]                                      # (N, D)
        ob = jnp.dot(a, vb, preferred_element_type=jnp.float32)
        og = ob.astype(gemm_dtype) if ob.dtype != gemm_dtype else ob
        # gate(concat([u, out])) == gate_u + out @ Wg_o   (biases already folded)
        gl = gate_u[r0:r1, :] + jnp.dot(og, wgo, preferred_element_type=jnp.float32)
        gated = jax.nn.sigmoid(gl)
        # relu(h + gated * out); lane-dense, sublane-aligned store (r0 % 16 == 0)
        o_ref[r0:r1, :] = jnp.maximum(hs[r0:r1, :] + gated * ob, 0.0)


# ---------------------------------------------------------------------------
# Host-side parameter folding / padding (done once)
# ---------------------------------------------------------------------------
def prepare_params(params):
    """Fold Linear_u into the gate and concatenate with Linear_v (exact algebra):
         gate(cat(u, out)) = h @ (Wu @ Wg_u) + (bu @ Wg_u + bg) + out @ Wg_o
       Returns (wcat, bcat, wgo) padded to a lane-dense D_pad (multiple of 128)."""
    wu, bu, wv, bv, wgu, wgo, bg = params
    D = wu.shape[0]
    assert wu.shape[1] == D, "residual add requires in_dim == out_dim"
    D_pad = _round_up(D, 128)
    hp = jax.lax.Precision.HIGHEST
    wug = jnp.dot(wu, wgu, precision=hp)               # (D, D)  == Wu @ Wg_u
    bg_eff = bg + jnp.dot(bu, wgu, precision=hp)       # (1, D)  == bu @ Wg_u + bg

    pw = lambda w: jnp.pad(w, ((0, D_pad - D), (0, D_pad - D)))
    pb = lambda b_: jnp.pad(b_, ((0, 0), (0, D_pad - D)))
    wcat = jnp.concatenate([pw(wv), pw(wug)], axis=1)   # (D_pad, 2*D_pad)
    bcat = jnp.concatenate([pb(bv), pb(bg_eff)], axis=1)  # (1, 2*D_pad)
    return (wcat, bcat, pw(wgo))


# ---------------------------------------------------------------------------
# Block sizing (generation-aware)
# ---------------------------------------------------------------------------
def _vmem_budget_bytes():
    cap = 64 * 1024 * 1024                       # safe fallback (v7x-sized)
    try:
        info = pltpu.get_tpu_info()
        cap = int(getattr(info, "vmem_capacity_bytes", cap))
    except Exception:
        pass
    # ~45 MiB on v7x (64 MiB/TC), ~90 MiB on v5e/v6e (128 MiB), capped for headroom.
    return min(int(cap * 0.7), 100 * 1024 * 1024)


def _pick_batch_block(B, n_pad, d_pad, adj_itemsize, budget):
    """Batches per grid step: biggest block that fits, aiming for >=256 rows per
    matmul, while keeping >=2 grid steps so both v7x TensorCores get work."""
    w_bytes = 2 * (3 * d_pad * d_pad * 4 + 2 * 2 * d_pad * 4)   # weights+bias, dbl-buf

    def fits(bb):
        rows = bb * n_pad
        io_blk = 2 * rows * d_pad * 4 + bb * n_pad * n_pad * adj_itemsize  # h+out+adj
        temps = rows * 2 * d_pad * 4            # fused [v | gate_u] f32
        temps += n_pad * n_pad * 4              # one f32-upcast adj slab
        temps += 3 * n_pad * d_pad * 4          # per-batch ob / gate / result temps
        return 2 * io_blk + temps + w_bytes <= budget   # double-buffered I/O blocks

    cand = [d for d in range(1, B + 1) if B % d == 0 and fits(d)]
    if not cand:
        return 1
    max_bb = max(B // 2, 1) if B >= 2 else B            # >=2 grid steps for megacore
    capped = [d for d in cand if d <= max_bb] or [min(cand)]
    big = [d for d in capped if d * n_pad >= 256]
    return min(big) if big else max(capped)


# ---------------------------------------------------------------------------
# Wrapper
# ---------------------------------------------------------------------------
def residual_gated_gcn_layer(h, adj, folded_params, *, adj_is_binary=True,
                             use_bf16_gemm=False):
    """h: (B, N, D) f32, adj: (B, N, N). Returns (B, N, D) f32."""
    B, N, D = h.shape
    wcat, bcat, wgo = folded_params
    D_pad = wcat.shape[0]
    N_pad = _round_up(N, 16)           # 16: bf16 sublane pack for the adj stream

    # Wrapper-side pad + flatten (free XLA layout plumbing, no in-kernel relayout).
    h_p = jnp.pad(h, ((0, 0), (0, N_pad - N), (0, D_pad - D)))
    h_flat = h_p.reshape(B * N_pad, D_pad)
    adj_p = jnp.pad(adj, ((0, 0), (0, N_pad - N), (0, N_pad - N)))
    # 0/1 adjacency -> bf16 is lossless and halves the dominant HBM/DMA term.
    adj_k = adj_p.astype(jnp.bfloat16) if adj_is_binary else adj_p.astype(jnp.float32)

    if use_bf16_gemm:
        wcat_k, wgo_k = wcat.astype(jnp.bfloat16), wgo.astype(jnp.bfloat16)
    else:
        wcat_k, wgo_k = wcat, wgo

    budget = _vmem_budget_bytes()
    BB = _pick_batch_block(B, N_pad, D_pad, adj_k.dtype.itemsize, budget)
    grid = (B // BB,)

    flops = 2 * B * N_pad * (3 * D_pad * D_pad + N_pad * D_pad)
    bytes_accessed = (2 * B * N_pad * D_pad * 4                      # h in + out
                      + B * N_pad * N_pad * adj_k.dtype.itemsize     # adj stream
                      + (3 * D_pad * D_pad + 4 * D_pad)
                      * wcat_k.dtype.itemsize)                       # weights (once)
    cost = pl.CostEstimate(flops=flops, transcendentals=B * N_pad * D_pad,
                           bytes_accessed=bytes_accessed)

    out_flat = pl.pallas_call(
        gcn_layer_kernel,
        out_shape=jax.ShapeDtypeStruct((B * N_pad, D_pad), jnp.float32),
        grid_spec=pltpu.PrefetchScalarGridSpec(
            num_scalar_prefetch=0,
            grid=grid,
            in_specs=[
                pl.BlockSpec((BB * N_pad, D_pad), lambda b: (b, 0)),   # h (flat)
                pl.BlockSpec((BB, N_pad, N_pad), lambda b: (b, 0, 0)),  # adj (bf16)
                pl.BlockSpec((D_pad, 2 * D_pad), lambda b: (0, 0)),     # [Wv | Wu@Wgu]
                pl.BlockSpec((1, 2 * D_pad), lambda b: (0, 0)),         # [bv | bg_eff]
                pl.BlockSpec((D_pad, D_pad), lambda b: (0, 0)),         # Wg_o
            ],
            out_specs=pl.BlockSpec((BB * N_pad, D_pad), lambda b: (b, 0)),
        ),
        compiler_params=pltpu.CompilerParams(
            dimension_semantics=("parallel",),
            vmem_limit_bytes=int(budget),
        ),
        cost_estimate=cost,
    )(h_flat, adj_k, wcat_k, bcat, wgo_k)

    return out_flat.reshape(B, N_pad, D_pad)[:, :N, :D]


# ---------------------------------------------------------------------------
# Init + pure-JAX reference (unfolded params) + test
# ---------------------------------------------------------------------------
def init_params(key, in_dim, out_dim):
    """Deterministic init mimicking nn.Linear's U(-1/sqrt(fan_in), 1/sqrt(fan_in)).
    Weights stored as (in, out) (already transposed vs. PyTorch)."""
    ks = jax.random.split(key, 6)
    s1 = 1.0 / np.sqrt(in_dim)
    s2 = 1.0 / np.sqrt(2 * in_dim)
    wu = jax.random.uniform(ks[0], (in_dim, out_dim), jnp.float32, -s1, s1)
    bu = jax.random.uniform(ks[1], (1, out_dim), jnp.float32, -s1, s1)
    wv = jax.random.uniform(ks[2], (in_dim, out_dim), jnp.float32, -s1, s1)
    bv = jax.random.uniform(ks[3], (1, out_dim), jnp.float32, -s1, s1)
    wg = jax.random.uniform(ks[4], (2 * in_dim, out_dim), jnp.float32, -s2, s2)
    bg = jax.random.uniform(ks[5], (1, out_dim), jnp.float32, -s2, s2)
    wgu, wgo = wg[:in_dim], wg[in_dim:]
    return (wu, bu, wv, bv, wgu, wgo, bg)


def reference(h, adj, params):
    """Pure-JAX reference reproducing the PyTorch module (unfolded params)."""
    wu, bu, wv, bv, wgu, wgo, bg = params
    u = h @ wu + bu
    v = h @ wv + bv
    out = jnp.matmul(adj, v)
    gated = jax.nn.sigmoid(
        jnp.concatenate([u, out], -1) @ jnp.concatenate([wgu, wgo], 0) + bg)
    return jax.nn.relu(h + gated * out)


if __name__ == "__main__":
    B, N, D = 2, 8, 32   # in_dim == out_dim == D (required by the residual add)
    key = jax.random.PRNGKey(0)
    kh, kadj, kp = jax.random.split(key, 3)

    h = jax.random.normal(kh, (B, N, D), jnp.float32)
    adj = (jax.random.uniform(kadj, (B, N, N), jnp.float32) > 0.5).astype(jnp.float32)
    params = init_params(kp, D, D)

    folded = prepare_params(params)
    y = residual_gated_gcn_layer(h, adj, folded)
    y = jax.block_until_ready(y)

    y_ref = reference(h, adj, params)
    np.testing.assert_allclose(np.asarray(y), np.asarray(y_ref), rtol=1e-4, atol=1e-4)

    print("KERNEL_OK")
</pallas_src>

<mosaic_0001>
module attributes {stable_mosaic.version = 11 : i64} {
  func.func @gcn_layer_kernel(%arg0: i32, %arg1: memref<16x128xf32, #tpu.memory_space<vmem>>, %arg2: memref<1x16x16xbf16, #tpu.memory_space<vmem>>, %arg3: memref<128x256xf32, #tpu.memory_space<vmem>>, %arg4: memref<1x256xf32, #tpu.memory_space<vmem>>, %arg5: memref<128x128xf32, #tpu.memory_space<vmem>>, %arg6: memref<16x128xf32, #tpu.memory_space<vmem>>) attributes {dimension_semantics = [#tpu.dimension_semantics<parallel>], iteration_bounds = array<i64: 2>, scalar_prefetch = 0 : i64, scratch_operands = 0 : i64, tpu.core_type = #tpu.core_type<tc>, window_params = [{transform_indices = @transform_0, window_bounds = array<i64: 16, 128>}, {transform_indices = @transform_1, window_bounds = array<i64: 1, 16, 16>}, {pipeline_mode = #tpu.pipeline_mode<synchronous>, transform_indices = @transform_2, window_bounds = array<i64: 128, 256>}, {pipeline_mode = #tpu.pipeline_mode<synchronous>, transform_indices = @transform_3, window_bounds = array<i64: 1, 256>}, {pipeline_mode = #tpu.pipeline_mode<synchronous>, transform_indices = @transform_4, window_bounds = array<i64: 128, 128>}, {transform_indices = @transform_5, window_bounds = array<i64: 16, 128>}]} {
    %c0 = arith.constant 0 : index
    %c0_0 = arith.constant 0 : index
    %0 = vector.load %arg1[%c0, %c0_0] : memref<16x128xf32, #tpu.memory_space<vmem>>, vector<16x128xf32>
    %c0_1 = arith.constant 0 : index
    %c0_2 = arith.constant 0 : index
    %1 = vector.load %arg3[%c0_1, %c0_2] : memref<128x256xf32, #tpu.memory_space<vmem>>, vector<128x256xf32>
    %cst = arith.constant dense<0.000000e+00> : vector<16x256xf32>
    %2 = tpu.matmul %0, %1, %cst {dimension_numbers = #tpu.dot_dimension_numbers<[1], [0], [0], [1], [0, 0, 1, 1], [], []>} : vector<16x128xf32>, vector<128x256xf32>, vector<16x256xf32> -> vector<16x256xf32>
    %c0_3 = arith.constant 0 : index
    %c0_4 = arith.constant 0 : index
    %3 = vector.load %arg4[%c0_3, %c0_4] : memref<1x256xf32, #tpu.memory_space<vmem>>, vector<1x256xf32>
    %4 = vector.broadcast %3 : vector<1x256xf32> to vector<16x256xf32>
    %5 = arith.addf %2, %4 : vector<16x256xf32>
    %6 = vector.extract_strided_slice %5 {offsets = [0, 0], sizes = [16, 128], strides = [1, 1]} : vector<16x256xf32> to vector<16x128xf32>
    %7 = vector.extract_strided_slice %5 {offsets = [0, 128], sizes = [16, 128], strides = [1, 1]} : vector<16x256xf32> to vector<16x128xf32>
    %c0_5 = arith.constant 0 : index
    %c0_6 = arith.constant 0 : index
    %8 = vector.load %arg5[%c0_5, %c0_6] : memref<128x128xf32, #tpu.memory_space<vmem>>, vector<128x128xf32>
    %c0_7 = arith.constant 0 : index
    %c0_8 = arith.constant 0 : index
    %c0_9 = arith.constant 0 : index
    %9 = vector.load %arg2[%c0_7, %c0_8, %c0_9] : memref<1x16x16xbf16, #tpu.memory_space<vmem>>, vector<1x16x16xbf16>
    %10 = vector.shape_cast %9 : vector<1x16x16xbf16> to vector<16x16xbf16>
    %11 = arith.extf %10 : vector<16x16xbf16> to vector<16x16xf32>
    %cst_10 = arith.constant dense<0.000000e+00> : vector<16x128xf32>
    %12 = tpu.matmul %11, %6, %cst_10 {dimension_numbers = #tpu.dot_dimension_numbers<[1], [0], [0], [1], [0, 0, 1, 1], [], []>} : vector<16x16xf32>, vector<16x128xf32>, vector<16x128xf32> -> vector<16x128xf32>
    %cst_11 = arith.constant dense<0.000000e+00> : vector<16x128xf32>
    %13 = tpu.matmul %12, %8, %cst_11 {dimension_numbers = #tpu.dot_dimension_numbers<[1], [0], [0], [1], [0, 0, 1, 1], [], []>} : vector<16x128xf32>, vector<128x128xf32>, vector<16x128xf32> -> vector<16x128xf32>
    %14 = arith.addf %7, %13 : vector<16x128xf32>
    %15 = arith.negf %14 : vector<16x128xf32>
    %16 = math.exp %15 : vector<16x128xf32>
    %cst_12 = arith.constant 1.000000e+00 : f32
    %17 = vector.broadcast %cst_12 : f32 to vector<16x128xf32>
    %18 = arith.addf %17, %16 : vector<16x128xf32>
    %19 = arith.divf %17, %18 : vector<16x128xf32>
    %20 = arith.mulf %19, %12 : vector<16x128xf32>
    %21 = arith.addf %0, %20 : vector<16x128xf32>
    %cst_13 = arith.constant 0.000000e+00 : f32
    %22 = vector.broadcast %cst_13 : f32 to vector<16x128xf32>
    %23 = arith.maximumf %21, %22 : vector<16x128xf32>
    %c0_14 = arith.constant 0 : index
    %c0_15 = arith.constant 0 : index
    %24 = vector.load %arg6[%c0_14, %c0_15] : memref<16x128xf32, #tpu.memory_space<vmem>>, vector<16x128xf32>
    tpu.vector_store %arg6[%c0_14, %c0_15], %23 {strides = array<i32>} : memref<16x128xf32, #tpu.memory_space<vmem>>, vector<16x128xf32>,
    return
  }
  func.func @transform_0(%arg0: i32) -> (i32, i32) {
    %c0_i32 = arith.constant 0 : i32
    %c0_i32_0 = arith.constant 0 : i32
    return %arg0, %c0_i32 : i32, i32
  }
  func.func @transform_1(%arg0: i32) -> (i32, i32, i32) {
    %c0_i32 = arith.constant 0 : i32
    %c0_i32_0 = arith.constant 0 : i32
    %c0_i32_1 = arith.constant 0 : i32
    return %arg0, %c0_i32, %c0_i32_0 : i32, i32, i32
  }
  func.func @transform_2(%arg0: i32) -> (i32, i32) {
    %c0_i32 = arith.constant 0 : i32
    %c0_i32_0 = arith.constant 0 : i32
    %c0_i32_1 = arith.constant 0 : i32
    return %c0_i32, %c0_i32_0 : i32, i32
  }
  func.func @transform_3(%arg0: i32) -> (i32, i32) {
    %c0_i32 = arith.constant 0 : i32
    %c0_i32_0 = arith.constant 0 : i32
    %c0_i32_1 = arith.constant 0 : i32
    return %c0_i32, %c0_i32_0 : i32, i32
  }
  func.func @transform_4(%arg0: i32) -> (i32, i32) {
    %c0_i32 = arith.constant 0 : i32
    %c0_i32_0 = arith.constant 0 : i32
    %c0_i32_1 = arith.constant 0 : i32
    return %c0_i32, %c0_i32_0 : i32, i32
  }
  func.func @transform_5(%arg0: i32) -> (i32, i32) {
    %c0_i32 = arith.constant 0 : i32
    %c0_i32_0 = arith.constant 0 : i32
    return %arg0, %c0_i32 : i32, i32
  }
}

</mosaic_0001>

<bundles_post_ra>
// kernel: tpu_custom_call.1
= control target key start
LH: loop header
LB: loop body
LE: loop exit
PB: predicated region body
PF: predicated region fallthrough
CT: control target
= control target key end

     0   :  { %s1228_s0 = inlined_call_operand.hbm [shape: f32[32,128], index: 0, kind: input, shape index: {}]   ;;  %s1229_s1 = inlined_call_operand.hbm [shape: bf16[2,16,16], index: 1, kind: input, shape index: {}]   ;;  %s1230_s2 = inlined_call_operand.hbm [shape: f32[128,256], index: 2, kind: input, shape index: {}]   ;;  %s1231_s3 = inlined_call_operand.vmem [shape: f32[1,256], index: 3, kind: input, shape index: {}]   ;;  %s1232_s4 = inlined_call_operand.hbm [shape: f32[128,128], index: 4, kind: input, shape index: {}]   ;;  %s1233_s5 = inlined_call_operand.hbm [shape: f32[32,128], index: 5, kind: output, shape index: {}]  }
   0x1   :  { %1237 = sst [smem:[#allocation18_spill]] %s1230_s2 }
   0x2   :  { %1238 = sst [smem:[#allocation19_spill]] %s1232_s4 }
   0x3   :  { %10 = vsyncpa [#allocation3], 0 }
   0x4   :  { %12 = vsyncpa [#allocation3 + $0x1], 0 }
   0x5   :  { %13 = vsyncpa [#allocation6], 0 }
   0x6   :  { %15 = vsyncpa [#allocation6 + $0x1], 0 }
   0x7   :  { %16 = vsyncpa [#allocation9], 0 }
   0x8   :  { %17 = vsyncpa [#allocation4], 0 }
   0x9   :  { %19 = vsyncpa [#allocation4 + $0x1], 0  ;;  %s1021_s18 = smov 0   ;;  %s1023_s19 = smov 0  }
   0xa   :  { %s1025_s20 = smov 0   ;;  %s1027_s21 = smov 0  }
   0xb LB: > { %1239 = sst [smem:[#allocation16_spill]] %s975_s20  ;;  %s1042_s22 = sadd.s32 4294967295, %s979_s21   ;;  %s979_s21 = sphi %s1027_s21, %s1255_s21   ;;  %s975_s20 = sphi %s1025_s20, %s1252_s20   ;;  %s971_s19 = sphi %s1023_s19, %s1254_s19   ;;  %s967_s18 = sphi %s1021_s18, %s1253_s18  }
   0xc   : > { %s660_s23 = sadd.s32 4294967294, %s979_s21   ;;  %p45_p0 = scmp.ne.s32.totalorder %s971_s19, %s967_s18 }
   0xd   : > { %p46_p1 = scmp.eq.s32.totalorder %s1042_s22, 0  ;;  %p158_p2 = scmp.eq.s32.totalorder %s1042_s22, 1 }
   0xe   : > { %p164_p3 = scmp.eq.s32.totalorder %s660_s23, 1  ;;  %p661_p5 = scmp.ge.s32.totalorder %s979_s21, 1 }
   0xf   : > { %p1051_p4 = por %p46_p1, %p45_p0  ;;  %p171_p7 = scmp.lt.s32.totalorder %s979_s21, 3 }
  0x10   : > { %p1056_p6 = por %p164_p3, %p45_p0  ;;  %s1242_s2 = sld [smem:[#allocation18_spill]] }
  0x11   : > { %p1064_p8 = pnand %p661_p5, %p171_p7  ;;  %s981_s30 = smov [#allocation7]  }
  0x12   : > { %s184_s6 = sshll.u32 %s981_s30, 4  ;;  %s1244_s4 = sld [smem:[#allocation19_spill]]  ;;  %s185_s6 = int_to_ptr.vmem [resolvable:$true] %s184_s6 }
  0x13   : > { %p707_p9 = pneg %p1064_p8  ;;  %s982_s10 = smov 256  }
  0x14   : > { %s983_s11 = smov 16   ;;  %s984_s12 = smov [#allocation8]  }
  0x15   : > { %p708_p10 = pnand %p707_p9, %p46_p1  ;;  %s201_s13 = sshll.u32 %s984_s12, 4  ;;  %s202_s13 = int_to_ptr.vmem [resolvable:$true] %s201_s13 }
  0x16   : > { %s182_s28 = sshll.u32 %s1242_s2, 4  ;;  %s1234_s14 = smov 128   ;;  %s183_s28 = int_to_ptr.hbm [resolvable:$true] %s182_s28 }
  0x17   : > { %710 = dma.hbm_to_vmem [thread:$0]  (!%p708_p10), %s183_s28, 4096, %s185_s6, [#allocation6], %s982_s10, %s982_s10, %s983_s11  }
  0x18   : > { %s199_s9 = sshll.u32 %s1244_s4, 4  ;;  %s1235_s15 = smov 8   ;;  %s200_s9 = int_to_ptr.hbm [resolvable:$true] %s199_s9 }
  0x19   : > { %713 = dma.hbm_to_vmem [thread:$0]  (!%p708_p10), %s200_s9, 2048, %s202_s13, [#allocation9], %s1234_s14, %s1234_s14, %s1235_s15  }
  0x1a   : > { %s1080_s16 = sadd.s32 1, %s979_s21   ;;  %s32_s23 = sadd.s32 1, %s975_s20 }
  0x1b   : > { %s29_s17 = ssub.s32 %s979_s21, %s1080_s16  ;;  %p39_p13 = scmp.ne.s32.totalorder %s975_s20, %s971_s19 }
  0x1c   : > { %p30_p12 = scmp.eq.s32.totalorder %s29_s17, 0  ;;  %p40_p0 = scmp.eq.s32.totalorder %s979_s21, 0 }
  0x1d   : > { %p1093_p5 = por %p158_p2, %p39_p13  ;;  %p727_p7 = scmp.lt.s32.totalorder %s979_s21, 2 }
  0x1e   : > { %s1089_s26 = scalar_select %p30_p12, %s975_s20, %s32_s23  }
  0x1f   : > { %p41_p3 = por %p40_p0, %p39_p13  ;;  %s1099_s28 = sand.u32 1, %s975_s20  }
  0x20   : > { %1245 = sst [smem:[#allocation17_spill]] %s1089_s26  ;;  %s665_s30 = sshll.u32 %s1099_s28, 4 }
  0x21   : > { %s686_s6 = sshll.u32 %s979_s21, 4  ;;  %s219_s10 = scalar_lea.vmem [#allocation2], %s665_s30 }
  0x22   : > { %s224_s9 = scalar_lea.hbm %s1228_s0, %s686_s6  ;;  %s227_s11 = sshll.u32 %s219_s10, 4  ;;  %s228_s11 = int_to_ptr.vmem [resolvable:$true] %s227_s11 }
  0x23   : > { %s225_s12 = sshll.u32 %s224_s9, 4  ;;  %p1106_p2 = pnand %p727_p7, %p41_p3  ;;  %s226_s12 = int_to_ptr.hbm [resolvable:$true] %s225_s12 }
  0x24   : > { %s237_s17 = sand.u32 1, %s979_s21   ;;  %s668_s23 = sshll.u32 %s1099_s28, 3 }
  0x25   : > { %s216_s14 = scalar_lea.sflag [#allocation3], %s1099_s28  ;;  %s841_s15 = sshra.s32 %s226_s12, 4  ;;  %s842_s15 = int_to_ptr.hbm [resolvable:$true] %s841_s15 }
  0x26   : > { %s843_s2 = scalar_lea.hbm %s842_s15, 16  ;;  %p845_p10 = pneg %p1106_p2 }
  0x27   : > { %p844_p9 = scmp.ne.s32.totalorder %s842_s15, %s843_s2  ;;  %s848_s7 = scalar_lea.hbm %s1228_s0, 32 }
  0x28   : > { %p849_p0 = scmp.lt.s32.totalorder %s842_s15, %s1228_s0  ;;  %p850_p3 = scmp.lt.s32.totalorder %s848_s7, %s843_s2 }
  0x29   : > { %p846_p12 = pnand %p845_p10, %p844_p9 }
  0x2a   : > { %p851_p7 = por %p850_p3, %p849_p0 }
  0x2b   : > { %p847_p13 = pneg %p846_p12 }
  0x2d   : > { %p852_p11 = pnand %p851_p7, %p847_p13 }
  0x2f   : > { %855 = shalt.err (!%p852_p11)
}
  0x30   : > { %s1248_s28 = smov 8   ;;  %s1249_s10 = smov 128  }
  0x31   : > { %717 = dma.hbm_to_vmem [thread:$0]  (!%p1106_p2), %s226_s12, 256, %s228_s11, %s216_s14, %s1249_s10, %s1249_s10, %s1248_s28  }
  0x32   : > { %s687_s4 = sshll.u32 %s979_s21, 3  ;;  %s241_s20 = scalar_lea.vmem [#allocation5], %s668_s23 }
  0x33   : > { %s246_s6 = scalar_lea.hbm %s1229_s1, %s687_s4  ;;  %s249_s8 = sshll.u32 %s241_s20, 4  ;;  %s250_s8 = int_to_ptr.vmem [resolvable:$true] %s249_s8 }
  0x34   : > { %s247_s15 = sshll.u32 %s246_s6, 4  ;;  %s238_s2 = scalar_lea.sflag [#allocation6], %s237_s17  ;;  %s248_s15 = int_to_ptr.hbm [resolvable:$true] %s247_s15 }
  0x35   : > { %s871_s7 = sshra.s32 %s248_s15, 4  ;;  %s878_s12 = scalar_lea.hbm %s1229_s1, 16  ;;  %s872_s7 = int_to_ptr.hbm [resolvable:$true] %s871_s7 }
  0x36   : > { %s873_s9 = scalar_lea.hbm %s872_s7, 8  ;;  %p879_p13 = scmp.lt.s32.totalorder %s872_s7, %s1229_s1 }
  0x37   : > { %p874_p11 = scmp.ne.s32.totalorder %s872_s7, %s873_s9  ;;  %p880_p0 = scmp.lt.s32.totalorder %s878_s12, %s873_s9 }
  0x39   : > { %p876_p9 = pnand %p874_p11, %p845_p10  ;;  %p881_p3 = por %p880_p0, %p879_p13 }
  0x3b   : > { %p877_p12 = pneg %p876_p9 }
  0x3d   : > { %p882_p7 = pnand %p881_p3, %p877_p12 }
  0x3f   : > { %885 = shalt.err (!%p882_p7)
}
  0x40   : > { %s987_s20 = smov 64   ;;  %s988_s17 = smov 4  }
  0x41   : > { %720 = dma.hbm_to_vmem [thread:$0]  (!%p1106_p2), %s248_s15, 128, %s250_s8, %s238_s2, %s987_s20, %s987_s20, %s988_s17  }
  0x42   : > { %261 = sbr.rel (%p1064_p8) target bundleno = 562 (0x232), region = 40  ;;  %s1147_s23 = sand.u32 (!%p1064_p8), 1, %s971_s19  }
  0x43   : > { %s672_s28 = sshll.u32 (!%p1064_p8), %s1147_s23, 4  ;;  %s264_s10 = scalar_lea.sflag (!%p1064_p8), [#allocation3], %s1147_s23 }
  0x44   : > { %s1153_s30 = scalar_lea.vmem (!%p1064_p8), [#allocation2], %s672_s28 }
  0x47   : > { %946 = dma.done.wait (%p1051_p4), %s264_s10, 256  }
  0x48   : > { %948 = vsyncadd (%p1051_p4), %s264_s10, 4294967040  ;;  %s273_s29 = sand.u32 1, %s1042_s22   ;;  %s673_s13 = sshll.u32 %s1147_s23, 3 }
  0x49   : > { %s274_s6 = scalar_lea.sflag [#allocation6], %s273_s29  ;;  %s1161_s8 = scalar_lea.vmem [#allocation5], %s673_s13 }
  0x4a   : > { %950 = dma.done.wait (%p1051_p4), %s274_s6, 128  }
  0x4b   : > { %952 = vsyncadd (%p1051_p4), %s274_s6, 4294967168 }
  0x4c   : > { %954 = dma.done.wait (%p46_p1), [#allocation6], 4096  }
  0x4d   : > { %956 = vsyncadd (%p46_p1), [#allocation6], 4294963200 }
  0x4e   : > { %958 = dma.done.wait (%p46_p1), [#allocation9], 2048  }
  0x4f   : > { %960 = vsyncadd (%p46_p1), [#allocation9], 4294965248  ;;  %v354_v0 = vld [vmem:[#allocation7 + $0xf0] sm:$0xff]  ;;  %v352_v1 = vld [vmem:[#allocation7 + $0xe0] sm:$0xff]  ;;  %vm428_vm0 = vcmask 130048   ;;  %s688_s2 = sshll.u32 %s1042_s22, 4 }
  0x50   : > { %362 = vmatpush.msra.mxu0 %v354_v0  ;;  %v350_v2 = vld [vmem:[#allocation7 + $0xd0] sm:$0xff]  ;;  %v348_v3 = vld [vmem:[#allocation7 + $0xc0] sm:$0xff]  ;;  %v1180_v17 = vld [vmem:[%s1153_s30 + $0x8] sm:$0xff]  ;;  %s541_s14 = scalar_lea.hbm %s1233_s5, %s688_s2  ;;  %s319_s11 = scalar_lea.vmem [#allocation10], %s672_s28 }
  0x51   : > { %v346_v4 = vld [vmem:[#allocation7 + $0xb0] sm:$0xff]  ;;  %v344_v5 = vld [vmem:[#allocation7 + $0xa0] sm:$0xff]  ;;  %v423_v18 = vld [vmem:[#allocation8 + $0x78] sm:$0xff]  ;;  %s542_s12 = sshll.u32 %s319_s11, 4  ;;  %s544_s22 = sshll.u32 %s541_s14, 4  ;;  %s543_s12 = int_to_ptr.vmem [resolvable:$true] %s542_s12  ;;  %s545_s22 = int_to_ptr.hbm [resolvable:$true] %s544_s22 }
  0x52   : > { %363 = vmatpush.msra.mxu0 %v352_v1  ;;  %v342_v6 = vld [vmem:[#allocation7 + $0x90] sm:$0xff]  ;;  %v340_v7 = vld [vmem:[#allocation7 + $0x80] sm:$0xff]  ;;  %v355_v20 = vld [vmem:[#allocation7 + $0xf8] sm:$0xff]  ;;  %458 = vmatpush.msra.mxu3 %v423_v18  ;;  %s530_s26 = scalar_lea.sflag [#allocation4], %s1147_s23  ;;  %s915_s4 = sshra.s32 %s545_s22, 4  ;;  %s916_s4 = int_to_ptr.hbm [resolvable:$true] %s915_s4 }
  0x53   : > { %v338_v8 = vld [vmem:[#allocation7 + $0x70] sm:$0xff]  ;;  %v336_v9 = vld [vmem:[#allocation7 + $0x60] sm:$0xff]  ;;  %385 = vmatpush.msra.mxu1 %v355_v20  ;;  %v353_v21 = vld [vmem:[#allocation7 + $0xe8] sm:$0xff]  ;;  %s917_s20 = scalar_lea.hbm %s916_s4, 16  ;;  %s921_s10 = scalar_lea.hbm %s1233_s5, 32 }
  0x54   : > { %364 = vmatpush.msra.mxu0 %v350_v2  ;;  %v334_v10 = vld [vmem:[#allocation7 + $0x50] sm:$0xff]  ;;  %v332_v11 = vld [vmem:[#allocation7 + $0x40] sm:$0xff]  ;;  %v421_v22 = vld [vmem:[#allocation8 + $0x68] sm:$0xff]  ;;  %p918_p1 = scmp.ne.s32.totalorder %s916_s4, %s917_s20  ;;  %p922_p2 = scmp.lt.s32.totalorder %s916_s4, %s1233_s5 }
  0x55   : > { %v330_v12 = vld [vmem:[#allocation7 + $0x30] sm:$0xff]  ;;  %v328_v13 = vld [vmem:[#allocation7 + $0x20] sm:$0xff]  ;;  %v351_v23 = vld [vmem:[#allocation7 + $0xd8] sm:$0xff]  ;;  %386 = vmatpush.msra.mxu1 %v353_v21  ;;  %p923_p10 = scmp.lt.s32.totalorder %s921_s10, %s917_s20 }
  0x56   : > { %365 = vmatpush.msra.mxu0 %v348_v3  ;;  %v326_v14 = vld [vmem:[#allocation7 + $0x10] sm:$0xff]  ;;  %v324_v15 = vld [vmem:[#allocation7] sm:$0xff]  ;;  %v349_v25 = vld [vmem:[#allocation7 + $0xc8] sm:$0xff]  ;;  %p919_p4 = pnand %p918_p1, %p1093_p5 }
  0x57   : > { %v1176_v16 = vld [vmem:[%s1153_s30] sm:$0xff]  ;;  %387 = vmatpush.msra.mxu1 %v351_v23  ;;  %v419_v26 = vld [vmem:[#allocation8 + $0x58] sm:$0xff]  ;;  %v345_v29 = vld [vmem:[#allocation7 + $0xa8] sm:$0xff]  ;;  %p924_p11 = por %p923_p10, %p922_p2 }
  0x58   : > { %366 = vmatpush.msra.mxu0 %v346_v4  ;;  %v422_v19 = vld [vmem:[#allocation8 + $0x70] sm:$0xff]  ;;  %v420_v24 = vld [vmem:[#allocation8 + $0x60] sm:$0xff]  ;;  %v347_v27 = vld [vmem:[#allocation7 + $0xb8] sm:$0xff]  ;;  %p920_p8 = pneg %p919_p4 }
  0x59   : > { %459 = vmatpush.msra.mxu3 %v422_v19  ;;  %388 = vmatpush.msra.mxu1 %v349_v25  ;;  %v418_v28 = vld [vmem:[#allocation8 + $0x50] sm:$0xff]  ;;  %v417_v31 = vld [vmem:[#allocation8 + $0x48] sm:$0xff]  ;;  %v343_v32 = vld [vmem:[#allocation7 + $0x98] sm:$0xff] }
  0x5a   : > { %367 = vmatpush.msra.mxu0 %v344_v5  ;;  %v416_v33 = vld [vmem:[#allocation8 + $0x40] sm:$0xff]  ;;  %v341_v34 = vld [vmem:[#allocation7 + $0x88] sm:$0xff]  ;;  %v356_v35 = vld [vmem:[%s1231_s3] sm:$0x3]  ;;  %p925_p9 = pnand %p924_p11, %p920_p8 }
  0x5b   : > { %460 = vmatpush.msra.mxu3 %v421_v22  ;;  %389 = vmatpush.msra.mxu1 %v347_v27  ;;  %v415_v36 = vld [vmem:[#allocation8 + $0x38] sm:$0xff]  ;;  %v414_v38 = vld [vmem:[#allocation8 + $0x30] sm:$0xff]  ;;  %v337_v39 = vld [vmem:[#allocation7 + $0x68] sm:$0xff]  ;;  %v358_v40 = vperm.slane %v356_v35, 0  ;;  %v359_v62 = vperm.slane %v356_v35, 1 }
  0x5c   : > { %368 = vmatpush.msra.mxu0 %v342_v6  ;;  %v339_v37 = vld [vmem:[#allocation7 + $0x78] sm:$0xff]  ;;  %v413_v43 = vld [vmem:[#allocation8 + $0x28] sm:$0xff]  ;;  %v412_v47 = vld [vmem:[#allocation8 + $0x20] sm:$0xff] }
  0x5d   : > { %461 = vmatpush.msra.mxu3 %v420_v24  ;;  %390 = vmatpush.msra.mxu1 %v345_v29  ;;  %v690_v41 = vld [vmem:[%s1161_s8] sm:$0xff]   ;;  %v333_v49 = vld [vmem:[#allocation7 + $0x48] sm:$0xff]  ;;  %v408_v56 = vld [vmem:[#allocation8] sm:$0xff] }
  0x5e   : > { %369 = vmatpush.msra.mxu0 %v340_v7  ;;  %v335_v45 = vld [vmem:[#allocation7 + $0x58] sm:$0xff]  ;;  %v691_v46 = vunpack.c.l.bf16 %v690_v41  ;;  %v410_v52 = vld [vmem:[#allocation8 + $0x10] sm:$0xff]  ;;  %v329_v53 = vld [vmem:[#allocation7 + $0x28] sm:$0xff]  ;;  %v692_v55 = vunpack.c.h.bf16 %v690_v41 }
  0x5f   : > { %462 = vmatpush.msra.mxu3 %v419_v26  ;;  %391 = vmatpush.msra.mxu1 %v343_v32  ;;  %v411_v50 = vld [vmem:[#allocation8 + $0x18] sm:$0xff]  ;;  %v409_v54 = vld [vmem:[#allocation8 + $0x8] sm:$0xff] }
  0x60   : > { %370 = vmatpush.msra.mxu0 %v338_v8  ;;  %v331_v51 = vld [vmem:[#allocation7 + $0x38] sm:$0xff]  ;;  %v325_v58 = vld [vmem:[#allocation7 + $0x8] sm:$0xff] }
  0x61   : > { %463 = vmatpush.msra.mxu3 %v418_v28  ;;  %392 = vmatpush.msra.mxu1 %v341_v34  ;;  %v327_v57 = vld [vmem:[#allocation7 + $0x18] sm:$0xff] }
  0x62   : > { %371 = vmatpush.msra.mxu0 %v336_v9 }
  0x63   : > { %464 = vmatpush.msra.mxu3 %v417_v31  ;;  %393 = vmatpush.msra.mxu1 %v339_v37 }
  0x64   : > { %372 = vmatpush.msra.mxu0 %v334_v10 }
  0x65   : > { %465 = vmatpush.msra.mxu3 %v416_v33  ;;  %394 = vmatpush.msra.mxu1 %v337_v39 }
  0x66   : > { %373 = vmatpush.msra.mxu0 %v332_v11 }
  0x67   : > { %466 = vmatpush.msra.mxu3 %v415_v36  ;;  %395 = vmatpush.msra.mxu1 %v335_v45 }
  0x68   : > { %374 = vmatpush.msra.mxu0 %v330_v12 }
  0x69   : > { %467 = vmatpush.msra.mxu3 %v414_v38  ;;  %396 = vmatpush.msra.mxu1 %v333_v49 }
  0x6a   : > { %375 = vmatpush.msra.mxu0 %v328_v13 }
  0x6b   : > { %468 = vmatpush.msra.mxu3 %v413_v43  ;;  %397 = vmatpush.msra.mxu1 %v331_v51 }
  0x6c   : > { %376 = vmatpush.msra.mxu0 %v326_v14 }
  0x6d   : > { %469 = vmatpush.msra.mxu3 %v412_v47  ;;  %398 = vmatpush.msra.mxu1 %v329_v53 }
  0x6e   : > { %377 = vmatpush.msra.mxu0 %v324_v15 }
  0x6f   : > { %378 = vmatmul.f32.vlgmr.msra.gmra.mxu0 %v1176_v16  ;;  %470 = vmatpush.msra.mxu3 %v411_v50 }
  0x70   : > { %399 = vmatpush.msra.mxu1 %v327_v57 }
  0x71   : > { %471 = vmatpush.msra.mxu3 %v410_v52 }
  0x72   : > { %400 = vmatpush.msra.mxu1 %v325_v58 }
  0x73   : > { %472 = vmatpush.msra.mxu3 %v409_v54  ;;  %401 = vmatmul.f32.vlgmr.msra.gmra.mxu1 %v1176_v16 }
  0x75   : > { %473 = vmatpush.msra.mxu3 %v408_v56 }
  0x77   : > { %381 = vmatmul.f32.gmra.mxu0 %v1180_v17 }
  0x7b   : > { %404 = vmatmul.f32.gmra.mxu1 %v1180_v17 }
  0xec   : > { %v379_v30 = vpop.f32.mrf.mxu0 }
  0xed   : > { %v380_v48 = vadd.f32 %v379_v30, %v358_v40 }
  0xf0   : > { %v402_v61 = vpop.f32.mrf.mxu1 }
  0xf1   : > { %v403_v63 = vadd.f32 %v402_v61, %v359_v62 }
  0xf4   : > { %v382_v42 = vpop.f32.mrf.mxu0 }
  0xf5   : > { %v383_v44 = vadd.f32 %v382_v42, %v358_v40 }
  0xf7   : > { %449 = vmatpush.msra.mxu2 %v383_v44 }
  0xf8   : > { %v405_v2 = vpop.f32.mrf.mxu1 }
  0xf9   : > { %450 = vmatpush.msra.mxu2 %v380_v48  ;;  %v406_v4 = vadd.f32 %v405_v2, %v359_v62 }
  0xfa   : > { %677 = vmatmul.msk.f32.vlgmr.msra.gmra.mxu2 %vm428_vm0, %v691_v46 }
 0x102   : > { %678 = vmatmul.msk.f32.gmra.mxu2 %vm428_vm0, %v692_v55 }
 0x17d   : > { %v452_v59 = vpop.f32.mrf.mxu2 }
 0x17e   : > { %474 = vmatmul.f32.vlgmr.msra.gmra.mxu3 %v452_v59 }
 0x185   : > { %v455_v60 = vpop.f32.mrf.mxu2 }
 0x186   : > { %477 = vmatmul.f32.gmra.mxu3 %v455_v60 }
 0x201   : > { %v475_v0 = vpop.f32.mrf.mxu3 }
 0x202   : > { %v481_v1 = vadd.f32 %v475_v0, %v403_v63 }
 0x204   : > { %v679_v3 = vmul.f32 -1.442695, %v481_v1 }
 0x206   : > { %773 = vpow2.f32 %v679_v3 }
 0x209   : > { %v478_v5 = vpop.f32.mrf.mxu3 }
 0x20a   : > { %v482_v6 = vadd.f32 %v478_v5, %v406_v4 }
 0x20c   : > { %v774_v7 = vpop.eup %773  ;;  %v680_v8 = vmul.f32 -1.442695, %v482_v6 }
 0x20d   : > { %v489_v9 = vadd.f32 1.0, %v774_v7 }
 0x20e   : > { %775 = vpow2.f32 %v680_v8 }
 0x20f   : > { %777 = vrcp.f32 %v489_v9  ;;  %v502_v15 = vand.u32 2147483648, %v489_v9  ;;  %v500_v19 = vand.u32 2147483647, %v489_v9  ;;  %vm496_vm2 = vweird.f32 %v489_v9 }
 0x211   : > { %v503_v22 = vor.u32 1.1754944e-38, %v502_v15  ;;  %vm501_vm4 = vcmp.eq.f32.partialorder %v500_v19, 8.507059e+37 }
 0x214   : > { %v776_v10 = vpop.eup %775 }
 0x215   : > { %v778_v11 = vpop.eup %777  ;;  %v490_v12 = vadd.f32 1.0, %v776_v10 }
 0x216   : > { %v492_v13 = vmul.f32 %v778_v11, %v489_v9  ;;  %vm497_vm1 = vweird.f32 %v778_v11 }
 0x217   : > { %779 = vrcp.f32 %v490_v12  ;;  %vm498_vm3 = vmor %vm496_vm2, %vm497_vm1  ;;  %v517_v28 = vand.u32 2147483648, %v490_v12  ;;  %v515_v30 = vand.u32 2147483647, %v490_v12  ;;  %vm511_vm6 = vweird.f32 %v490_v12 }
 0x218   : > { %v493_v14 = vsub.f32 1.0, %v492_v13 }
 0x219   : > { %v518_v34 = vor.u32 1.1754944e-38, %v517_v28  ;;  %vm516_vm8 = vcmp.eq.f32.partialorder %v515_v30, 8.507059e+37 }
 0x21a   : > { %v494_v18 = vmul.f32 %v778_v11, %v493_v14 }
 0x21c   : > { %v495_v20 = vadd.f32 %v778_v11, %v494_v18 }
 0x21d   : > { %v780_v21 = vpop.eup %779 }
 0x21e   : > { %v499_v23 = vsel %vm498_vm3, %v778_v11, %v495_v20  ;;  %v507_v24 = vmul.f32 %v780_v21, %v490_v12  ;;  %vm512_vm5 = vweird.f32 %v780_v21 }
 0x21f   : > { %v504_v25 = vsel %vm501_vm4, %v503_v22, %v499_v23  ;;  %vm513_vm7 = vmor %vm511_vm6, %vm512_vm5 }
 0x220   : > { %v521_v26 = vmul.f32 %v504_v25, %v452_v59  ;;  %v508_v27 = vsub.f32 1.0, %v507_v24 }
 0x222   : > { %v509_v29 = vmul.f32 %v780_v21, %v508_v27  ;;  %v523_v31 = vadd.f32 %v521_v26, %v1176_v16 }
 0x224   : > { %v510_v32 = vadd.f32 %v780_v21, %v509_v29  ;;  %v525_v33 = vmax.f32 %v523_v31, 0.0 }
 0x226   : > { %v514_v35 = vsel %vm513_vm7, %v780_v21, %v510_v32  ;;  %527 = vst [vmem:[%s319_s11] sm:$0xff] %v525_v33 }
 0x227   : > { %v519_v36 = vsel %vm516_vm8, %v518_v34, %v514_v35 }
 0x228   : > { %v522_v37 = vmul.f32 %v519_v36, %v455_v60 }
 0x22a   : > { %v524_v16 = vadd.f32 %v522_v37, %v1180_v17 }
 0x22c   : > { %v526_v38 = vmax.f32 %v524_v16, 0.0 }
 0x22e   : > { %528 = vst [vmem:[%s319_s11 + $0x8] sm:$0xff] %v526_v38 }
 0x22f   : > { %928 = shalt.err (!%p925_p9)
}
 0x230   : > { %s989_s23 = smov 128   ;;  %s990_s13 = smov 8  }
 0x231   : > { %705 = dma.vmem_to_hbm [thread:$0]  (%p1093_p5), %s543_s12, 256, %s545_s22, %s530_s26, %s989_s23, %s989_s23, %s990_s13  }
 0x232 PF: > { %s559_s6 = sand.u32 1, %s967_s18   ;;  %p1250_p12 = scmp.ge.s32.totalorder %s979_s21, 2 }
 0x233   : > { %s560_s8 = scalar_lea.sflag [#allocation4], %s559_s6 }
 0x234   : > { %p722_p13 = pnand %p1250_p12, %p1056_p6 }
 0x236   : > { %p723_p0 = pneg %p722_p13 }
 0x238   : > { %962 = dma.done.wait (%p723_p0), %s560_s8, 256  }
 0x239   : > { %964 = vsyncadd (%p723_p0), %s560_s8, 4294967040  ;;  %s1251_s24 = sld [smem:[#allocation16_spill]]  ;;  %p22_p3 = scmp.ge.s32.totalorder %s1080_s16, 4  }
 0x23a   : > { %s1252_s20 = sld [smem:[#allocation17_spill]]  ;;  %s1253_s18 = smov %s971_s19 }
 0x23b   : > { %s1255_s21 = smov %s1080_s16  ;;  %24 = sbr.rel (!%p22_p3) target bundleno = 11 (0xb), region = 106 }
 0x23f   : > { %s1254_s19 = smov %s1251_s24 }
 0x240   :  { %566 = vsyncpa [#allocation3], 1 }
 0x241   :  { %568 = vsyncpa [#allocation3 + $0x1], 1 }
 0x242   :  { %569 = vsyncpa [#allocation6], 1 }
 0x243   :  { %571 = vsyncpa [#allocation6 + $0x1], 1 }
 0x244   :  { %572 = vsyncpa [#allocation9], 1 }
 0x245   :  { %573 = vsyncpa [#allocation4], 1 }
 0x246   :  { %575 = vsyncpa [#allocation4 + $0x1], 1 }

</bundles_post_ra>
